<compile_context>
chip_gen: v5e
topology: v5e:2x2
jax: 0.10.0
libtpu: 0.0.40
codegen_flags: <defaults>
</compile_context>

<pallas_src>
import functools
import math

import jax
import jax.numpy as jnp
from jax.experimental import pallas as pl
from jax.experimental.pallas import tpu as pltpu


def _round_up(x, m):
    return ((x + m - 1) // m) * m


def _dqn_mlp_kernel(num_linear, *refs):
    """refs = (x_ref, w0, b0, w1, b1, ..., w{L-1}, b{L-1}, out_ref).

    h = x
    for i in range(L-1): h = relu(h @ Wi + bi)
    out = h @ W{L-1} + b{L-1}

    Matmuls run on the MXU with bf16 operands and f32 accumulation;
    bias add / ReLU run on the VPU in f32.  Final store is bf16.
    """
    x_ref = refs[0]
    out_ref = refs[-1]
    param_refs = refs[1:-1]

    h = x_ref[...]                                   # bf16 activations
    for i in range(num_linear):
        w = param_refs[2 * i][...]                   # bf16, VMEM-resident
        b = param_refs[2 * i + 1][...]               # f32 (1, out)
        h = jnp.dot(h, w, preferred_element_type=jnp.float32) + b
        if i < num_linear - 1:
            h = jnp.maximum(h, 0.0).astype(jnp.bfloat16)
    out_ref[...] = h.astype(out_ref.dtype)


def dqn_forward(states, params, *, max_batch_tile=4096):
    """DQN MLP forward pass with a batch-tiled Pallas TPU kernel.

    Args:
      states: (*, S) float array.
      params: list of (W, b) with W shaped (in_dim, out_dim), b shaped
              (1, out_dim) (or (out_dim,)), in float32.

    Returns:
      (*, A) float32 array of Q-values.
    """
    num_linear = len(params)
    state_dim = params[0][0].shape[0]
    action_dim = params[-1][0].shape[1]

    lead_shape = states.shape[:-1]
    assert states.shape[-1] == state_dim
    batch = 1
    for d in lead_shape:
        batch *= d

    out_pad = _round_up(action_dim, 128)      # lane-dense output stores

    # ---- pack / pad params (weights pre-cast to bf16 for the MXU) ---------
    flat_params = []
    weight_bytes = 0
    for li, (w, b) in enumerate(params):
        w32 = jnp.asarray(w, jnp.float32)
        b32 = jnp.asarray(b, jnp.float32).reshape(1, -1)
        if li == num_linear - 1 and w32.shape[1] != out_pad:
            w32 = jnp.pad(w32, ((0, 0), (0, out_pad - w32.shape[1])))
            b32 = jnp.pad(b32, ((0, 0), (0, out_pad - b32.shape[1])))
        w_bf = w32.astype(jnp.bfloat16)
        flat_params.append(w_bf)
        flat_params.append(b32)
        weight_bytes += w_bf.size * 2 + b32.size * 4

    # ---- generation-aware VMEM budget --------------------------------------
    vmem_cap = 64 << 20
    try:
        vmem_cap = int(pltpu.get_tpu_info().vmem_capacity_bytes)
    except Exception:
        pass
    if vmem_cap >= (96 << 20):          # v5e / v6e: 128 MiB physical VMEM
        budget_cap = 80 << 20
    else:                               # v7x (64 MiB / TC) or unknown
        budget_cap = 28 << 20

    # Constant-index weight/bias blocks are still double-buffered by the
    # pipeline, so charge 2x their footprint.
    resident_bytes = 2 * weight_bytes
    budget = budget_cap - resident_bytes

    # ---- pick batch tile against the budget (lane-padded accounting) ------
    widths = [state_dim] + [w.shape[1] for w, _ in params[:-1]] + [out_pad]
    max_width_pad = max(_round_up(wd, 128) for wd in widths)
    s_pad = _round_up(state_dim, 128)       # x block is lane-padded in VMEM

    def _tile_bytes(t):
        return t * (2 * s_pad * 2           # double-buffered bf16 x tiles
                    + 2 * out_pad * 2       # double-buffered bf16 out tiles
                    + 3 * max_width_pad * 4)  # live f32 activation slack

    tb = max_batch_tile
    while tb > 16 and _tile_bytes(tb) > budget:
        tb //= 2
    tb = max(min(tb, _round_up(batch, 16)), 16)   # 16-row sublane alignment (bf16)

    # Force >= 2 grid steps when the batch allows, so "parallel" can engage
    # the second v7x TensorCore (single-step grids leave it idle).
    if _round_up(batch, 16) > 16 and _round_up(batch, tb) // tb < 2:
        tb = max(_round_up((batch + 1) // 2, 16), 16)

    batch_pad = _round_up(batch, tb)
    grid = (batch_pad // tb,)

    # ---- input: fold pad + bf16 cast into one copy ------------------------
    x2d = states.reshape(batch, state_dim)
    if batch_pad != batch:
        x2d = jnp.pad(x2d, ((0, batch_pad - batch), (0, 0)))
    x2d = x2d.astype(jnp.bfloat16)

    in_specs = [pl.BlockSpec((tb, state_dim), lambda i: (i, 0))]
    for p in flat_params:
        in_specs.append(pl.BlockSpec(p.shape, lambda i: (0, 0)))  # resident
    out_specs = pl.BlockSpec((tb, out_pad), lambda i: (i, 0))

    needed = resident_bytes + _tile_bytes(tb) + (4 << 20)
    vmem_limit = int(min(max(needed, 16 << 20), (vmem_cap * 3) // 4))

    cost = pl.CostEstimate(
        flops=2 * batch_pad * sum(flat_params[2 * i].shape[0] *
                                  flat_params[2 * i].shape[1]
                                  for i in range(num_linear)),
        transcendentals=0,
        bytes_accessed=batch_pad * state_dim * 2      # bf16 x read
                       + weight_bytes                 # params read once
                       + batch_pad * out_pad * 2,     # bf16 out write
    )

    kernel = functools.partial(_dqn_mlp_kernel, num_linear)

    out2d = pl.pallas_call(
        kernel,
        out_shape=jax.ShapeDtypeStruct((batch_pad, out_pad), jnp.bfloat16),
        grid_spec=pltpu.PrefetchScalarGridSpec(
            num_scalar_prefetch=0,
            grid=grid,
            in_specs=in_specs,
            out_specs=out_specs,
        ),
        compiler_params=pltpu.CompilerParams(
            dimension_semantics=("parallel",),
            vmem_limit_bytes=vmem_limit,
        ),
        cost_estimate=cost,
    )(x2d, *flat_params)

    # Slice off batch/action padding; cast back to f32 to match the module's
    # float32 output semantics (the heavy padded writeback already happened
    # in bf16 inside the kernel; this op touches only the real (B, A) view).
    out2d = out2d[:batch, :action_dim].astype(jnp.float32)
    return out2d.reshape(*lead_shape, action_dim)


def init_dqn_params(key, state_dim, action_dim, num_layers=3, hidden_dim=256):
    """Deterministic init mimicking nn.Linear's U(-1/sqrt(fan_in), 1/sqrt(fan_in)).

    Returns list of (W, b) with W: (in_dim, out_dim), b: (1, out_dim).
    """
    dims = [state_dim] + [hidden_dim] * (num_layers - 1) + [action_dim]
    params = []
    for i in range(num_layers):
        fan_in, fan_out = dims[i], dims[i + 1]
        key, kw, kb = jax.random.split(key, 3)
        bound = 1.0 / math.sqrt(fan_in)
        w = jax.random.uniform(kw, (fan_in, fan_out), jnp.float32, -bound, bound)
        b = jax.random.uniform(kb, (1, fan_out), jnp.float32, -bound, bound)
        params.append((w, b))
    return params


def _reference_forward(states, params):
    h = states.astype(jnp.float32)
    for i, (w, b) in enumerate(params):
        h = h @ w + b
        if i < len(params) - 1:
            h = jnp.maximum(h, 0.0)
    return h


if __name__ == "__main__":
    key = jax.random.PRNGKey(0)
    state_dim, action_dim = 16, 8
    num_layers, hidden_dim = 3, 32

    k_params, k_states = jax.random.split(key)
    params = init_dqn_params(k_params, state_dim, action_dim,
                             num_layers=num_layers, hidden_dim=hidden_dim)

    # (*, S) input with extra leading dims, like PyTorch's forward allows.
    states = jax.random.normal(k_states, (2, 4, state_dim), jnp.float32)

    q_vals = dqn_forward(states, params)
    q_vals = jax.block_until_ready(q_vals)

    # Sanity-check against a pure-JAX f32 reference (bf16 MXU operands and
    # bf16 activations/output => looser tolerance than pure f32).
    q_ref = _reference_forward(states, params)
    assert q_vals.shape == (2, 4, action_dim)
    assert jnp.allclose(q_vals, q_ref, atol=5e-2, rtol=5e-2), (
        float(jnp.max(jnp.abs(q_vals - q_ref))))

    print("KERNEL_OK")
</pallas_src>

<mosaic_0001>
module attributes {stable_mosaic.version = 11 : i64} {
  func.func @_dqn_mlp_kernel(%arg0: i32, %arg1: memref<16x16xbf16, #tpu.memory_space<vmem>>, %arg2: memref<16x32xbf16, #tpu.memory_space<vmem>>, %arg3: memref<1x32xf32, #tpu.memory_space<vmem>>, %arg4: memref<32x32xbf16, #tpu.memory_space<vmem>>, %arg5: memref<1x32xf32, #tpu.memory_space<vmem>>, %arg6: memref<32x128xbf16, #tpu.memory_space<vmem>>, %arg7: memref<1x128xf32, #tpu.memory_space<vmem>>, %arg8: memref<16x128xbf16, #tpu.memory_space<vmem>>) attributes {dimension_semantics = [#tpu.dimension_semantics<parallel>], iteration_bounds = array<i64: 1>, scalar_prefetch = 0 : i64, scratch_operands = 0 : i64, tpu.core_type = #tpu.core_type<tc>, window_params = [{transform_indices = @transform_0, window_bounds = array<i64: 16, 16>}, {pipeline_mode = #tpu.pipeline_mode<synchronous>, transform_indices = @transform_1, window_bounds = array<i64: 16, 32>}, {pipeline_mode = #tpu.pipeline_mode<synchronous>, transform_indices = @transform_2, window_bounds = array<i64: 1, 32>}, {pipeline_mode = #tpu.pipeline_mode<synchronous>, transform_indices = @transform_3, window_bounds = array<i64: 32, 32>}, {pipeline_mode = #tpu.pipeline_mode<synchronous>, transform_indices = @transform_4, window_bounds = array<i64: 1, 32>}, {pipeline_mode = #tpu.pipeline_mode<synchronous>, transform_indices = @transform_5, window_bounds = array<i64: 32, 128>}, {pipeline_mode = #tpu.pipeline_mode<synchronous>, transform_indices = @transform_6, window_bounds = array<i64: 1, 128>}, {transform_indices = @transform_7, window_bounds = array<i64: 16, 128>}]} {
    %c0 = arith.constant 0 : index
    %c0_0 = arith.constant 0 : index
    %0 = vector.load %arg1[%c0, %c0_0] : memref<16x16xbf16, #tpu.memory_space<vmem>>, vector<16x16xbf16>
    %c0_1 = arith.constant 0 : index
    %c0_2 = arith.constant 0 : index
    %1 = vector.load %arg2[%c0_1, %c0_2] : memref<16x32xbf16, #tpu.memory_space<vmem>>, vector<16x32xbf16>
    %c0_3 = arith.constant 0 : index
    %c0_4 = arith.constant 0 : index
    %2 = vector.load %arg3[%c0_3, %c0_4] : memref<1x32xf32, #tpu.memory_space<vmem>>, vector<1x32xf32>
    %cst = arith.constant dense<0.000000e+00> : vector<16x32xf32>
    %3 = tpu.matmul %0, %1, %cst {dimension_numbers = #tpu.dot_dimension_numbers<[1], [0], [0], [1], [0, 0, 1, 1], [], []>} : vector<16x16xbf16>, vector<16x32xbf16>, vector<16x32xf32> -> vector<16x32xf32>
    %4 = vector.broadcast %2 : vector<1x32xf32> to vector<16x32xf32>
    %5 = arith.addf %3, %4 : vector<16x32xf32>
    %cst_5 = arith.constant 0.000000e+00 : f32
    %6 = vector.broadcast %cst_5 : f32 to vector<16x32xf32>
    %7 = arith.maximumf %5, %6 : vector<16x32xf32>
    %8 = arith.truncf %7 : vector<16x32xf32> to vector<16x32xbf16>
    %c0_6 = arith.constant 0 : index
    %c0_7 = arith.constant 0 : index
    %9 = vector.load %arg4[%c0_6, %c0_7] : memref<32x32xbf16, #tpu.memory_space<vmem>>, vector<32x32xbf16>
    %c0_8 = arith.constant 0 : index
    %c0_9 = arith.constant 0 : index
    %10 = vector.load %arg5[%c0_8, %c0_9] : memref<1x32xf32, #tpu.memory_space<vmem>>, vector<1x32xf32>
    %cst_10 = arith.constant dense<0.000000e+00> : vector<16x32xf32>
    %11 = tpu.matmul %8, %9, %cst_10 {dimension_numbers = #tpu.dot_dimension_numbers<[1], [0], [0], [1], [0, 0, 1, 1], [], []>} : vector<16x32xbf16>, vector<32x32xbf16>, vector<16x32xf32> -> vector<16x32xf32>
    %12 = vector.broadcast %10 : vector<1x32xf32> to vector<16x32xf32>
    %13 = arith.addf %11, %12 : vector<16x32xf32>
    %cst_11 = arith.constant 0.000000e+00 : f32
    %14 = vector.broadcast %cst_11 : f32 to vector<16x32xf32>
    %15 = arith.maximumf %13, %14 : vector<16x32xf32>
    %16 = arith.truncf %15 : vector<16x32xf32> to vector<16x32xbf16>
    %c0_12 = arith.constant 0 : index
    %c0_13 = arith.constant 0 : index
    %17 = vector.load %arg6[%c0_12, %c0_13] : memref<32x128xbf16, #tpu.memory_space<vmem>>, vector<32x128xbf16>
    %c0_14 = arith.constant 0 : index
    %c0_15 = arith.constant 0 : index
    %18 = vector.load %arg7[%c0_14, %c0_15] : memref<1x128xf32, #tpu.memory_space<vmem>>, vector<1x128xf32>
    %cst_16 = arith.constant dense<0.000000e+00> : vector<16x128xf32>
    %19 = tpu.matmul %16, %17, %cst_16 {dimension_numbers = #tpu.dot_dimension_numbers<[1], [0], [0], [1], [0, 0, 1, 1], [], []>} : vector<16x32xbf16>, vector<32x128xbf16>, vector<16x128xf32> -> vector<16x128xf32>
    %20 = vector.broadcast %18 : vector<1x128xf32> to vector<16x128xf32>
    %21 = arith.addf %19, %20 : vector<16x128xf32>
    %22 = arith.truncf %21 : vector<16x128xf32> to vector<16x128xbf16>
    %c0_17 = arith.constant 0 : index
    %c0_18 = arith.constant 0 : index
    %23 = vector.load %arg8[%c0_17, %c0_18] : memref<16x128xbf16, #tpu.memory_space<vmem>>, vector<16x128xbf16>
    tpu.vector_store %arg8[%c0_17, %c0_18], %22 {strides = array<i32>} : memref<16x128xbf16, #tpu.memory_space<vmem>>, vector<16x128xbf16>,
    return
  }
  func.func @transform_0(%arg0: i32) -> (i32, i32) {
    %c0_i32 = arith.constant 0 : i32
    %c0_i32_0 = arith.constant 0 : i32
    return %arg0, %c0_i32 : i32, i32
  }
  func.func @transform_1(%arg0: i32) -> (i32, i32) {
    %c0_i32 = arith.constant 0 : i32
    %c0_i32_0 = arith.constant 0 : i32
    %c0_i32_1 = arith.constant 0 : i32
    return %c0_i32, %c0_i32_0 : i32, i32
  }
  func.func @transform_2(%arg0: i32) -> (i32, i32) {
    %c0_i32 = arith.constant 0 : i32
    %c0_i32_0 = arith.constant 0 : i32
    %c0_i32_1 = arith.constant 0 : i32
    return %c0_i32, %c0_i32_0 : i32, i32
  }
  func.func @transform_3(%arg0: i32) -> (i32, i32) {
    %c0_i32 = arith.constant 0 : i32
    %c0_i32_0 = arith.constant 0 : i32
    %c0_i32_1 = arith.constant 0 : i32
    return %c0_i32, %c0_i32_0 : i32, i32
  }
  func.func @transform_4(%arg0: i32) -> (i32, i32) {
    %c0_i32 = arith.constant 0 : i32
    %c0_i32_0 = arith.constant 0 : i32
    %c0_i32_1 = arith.constant 0 : i32
    return %c0_i32, %c0_i32_0 : i32, i32
  }
  func.func @transform_5(%arg0: i32) -> (i32, i32) {
    %c0_i32 = arith.constant 0 : i32
    %c0_i32_0 = arith.constant 0 : i32
    %c0_i32_1 = arith.constant 0 : i32
    return %c0_i32, %c0_i32_0 : i32, i32
  }
  func.func @transform_6(%arg0: i32) -> (i32, i32) {
    %c0_i32 = arith.constant 0 : i32
    %c0_i32_0 = arith.constant 0 : i32
    %c0_i32_1 = arith.constant 0 : i32
    return %c0_i32, %c0_i32_0 : i32, i32
  }
  func.func @transform_7(%arg0: i32) -> (i32, i32) {
    %c0_i32 = arith.constant 0 : i32
    %c0_i32_0 = arith.constant 0 : i32
    return %arg0, %c0_i32 : i32, i32
  }
}

</mosaic_0001>

<bundles_post_ra>
// kernel: tpu_custom_call.1
= control target key start
LH: loop header
LB: loop body
LE: loop exit
PB: predicated region body
PF: predicated region fallthrough
CT: control target
= control target key end

     0   :  { %12 = vsyncpa [#allocation3], 0  ;;  %s496_s0 = inlined_call_operand.hbm [shape: bf16[16,16], index: 0, kind: input, shape index: {}]   ;;  %s497_s1 = inlined_call_operand.hbm [shape: bf16[16,32], index: 1, kind: input, shape index: {}]   ;;  %s498_s2 = inlined_call_operand.vmem [shape: f32[1,32], index: 2, kind: input, shape index: {}]   ;;  %s499_s3 = inlined_call_operand.hbm [shape: bf16[32,32], index: 3, kind: input, shape index: {}]   ;;  %s500_s4 = inlined_call_operand.vmem [shape: f32[1,32], index: 4, kind: input, shape index: {}]   ;;  %s501_s5 = inlined_call_operand.hbm [shape: bf16[32,128], index: 5, kind: input, shape index: {}]   ;;  %s502_s6 = inlined_call_operand.vmem [shape: f32[1,128], index: 6, kind: input, shape index: {}]   ;;  %s503_s7 = inlined_call_operand.hbm [shape: bf16[16,128], index: 7, kind: output, shape index: {}]  }
   0x1   :  { %13 = vsyncpa [#allocation6], 0 }
   0x2   :  { %14 = vsyncpa [#allocation9], 0 }
   0x3   :  { %15 = vsyncpa [#allocation4], 0  ;;  %s33_s26 = sshll.u32 %s497_s1, 4  ;;  %s410_s27 = smov [#allocation5]   ;;  %s34_s26 = int_to_ptr.hbm [resolvable:$true] %s33_s26 }
   0x4   :  { %s35_s28 = sshll.u32 %s410_s27, 4  ;;  %s20_s8 = sshll.u32 %s496_s0, 4  ;;  %s36_s28 = int_to_ptr.vmem [resolvable:$true] %s35_s28  ;;  %s21_s8 = int_to_ptr.hbm [resolvable:$true] %s20_s8 }
   0x5   :  { %s411_s9 = smov 64   ;;  %s412_s10 = smov 4  }
   0x6   :  { %41 = dma.hbm_to_vmem [thread:$0]  %s34_s26, 128, %s36_s28, [#allocation6], %s411_s9, %s411_s9, %s412_s10  }
   0x7   :  { %s413_s11 = smov [#allocation2]   ;;  %s48_s1 = sshll.u32 %s499_s3, 4  ;;  %s49_s1 = int_to_ptr.hbm [resolvable:$true] %s48_s1 }
   0x8   :  { %s22_s12 = sshll.u32 %s413_s11, 4  ;;  %s63_s16 = sshll.u32 %s501_s5, 4  ;;  %s23_s12 = int_to_ptr.vmem [resolvable:$true] %s22_s12  ;;  %s64_s16 = int_to_ptr.hbm [resolvable:$true] %s63_s16 }
   0x9   :  { %28 = dma.hbm_to_vmem [thread:$0]  %s21_s8, 128, %s23_s12, [#allocation3], %s411_s9, %s411_s9, %s412_s10  }
   0xa   :  { %s414_s17 = smov [#allocation7]   ;;  %s415_s19 = smov [#allocation8]  }
   0xb   :  { %s50_s18 = sshll.u32 %s414_s17, 4  ;;  %s65_s3 = sshll.u32 %s415_s19, 4  ;;  %s51_s18 = int_to_ptr.vmem [resolvable:$true] %s50_s18  ;;  %s66_s3 = int_to_ptr.vmem [resolvable:$true] %s65_s3 }
   0xc   :  { %56 = dma.hbm_to_vmem [thread:$0]  %s49_s1, 256, %s51_s18, [#allocation6], %s411_s9, %s411_s9, %s412_s10  }
   0xd   :  { %71 = dma.hbm_to_vmem [thread:$0]  %s64_s16, 256, %s66_s3, [#allocation9], %s411_s9, %s411_s9, %s412_s10  }
   0xe   :  { %402 = dma.done.wait [#allocation3], 128  }
   0xf   :  { %403 = vsyncadd [#allocation3], 4294967168 }
  0x10   :  { %404 = dma.done.wait [#allocation6], 384  }
  0x11   :  { %405 = vsyncadd [#allocation6], 4294966912 }
  0x12   :  { %406 = dma.done.wait [#allocation9], 256  }
  0x13   :  { %407 = vsyncadd [#allocation9], 4294967040  ;;  %v262_v0 = vld [vmem:[#allocation5] sm:$0xff]  ;;  %v261_v1 = vld [vmem:[#allocation2] sm:$0xff]  ;;  %vm110_vm0 = vcmask 130048   ;;  %vm151_vm1 = vcmask 261120  }
  0x14   :  { %121 = vmatpush.bf16.msra.mxu0 %v262_v0  ;;  %v264_v2 = vld [vmem:[#allocation7 + $0x8] sm:$0xff]  ;;  %v263_v3 = vld [vmem:[#allocation7] sm:$0xff]  ;;  %v279_v5 = vld [vmem:[%s498_s2] ss:$0 sm:$0xff]  ;;  %s416_s24 = smov [#allocation10]   ;;  %s219_s28 = sshll.u32 %s503_s7, 4  ;;  %s220_s28 = int_to_ptr.hbm [resolvable:$true] %s219_s28 }
  0x15   :  { %161 = vmatpush.bf16.msra.mxu1 %v264_v2  ;;  %v266_v12 = vld [vmem:[#allocation8 + $0x8] sm:$0xff]  ;;  %v265_v13 = vld [vmem:[#allocation8] sm:$0xff]  ;;  %s217_s25 = sshll.u32 %s416_s24, 4  ;;  %s218_s25 = int_to_ptr.vmem [resolvable:$true] %s217_s25 }
  0x16   :  { %201 = vmatpush.bf16.msra.mxu2 %v266_v12  ;;  %v280_v15 = vld [vmem:[%s500_s4] ss:$0 sm:$0xff] }
  0x17   :  { %242 = vmatmul.msk.bf16.vlgmr.msra.gmra.mxu0 %vm110_vm0, %v261_v1  ;;  %v281_v23 = vld [vmem:[%s502_s6] ss:$0 sm:$0xff] }
  0x19   :  { %162 = vmatpush.bf16.msra.mxu1 %v263_v3 }
  0x1a   :  { %202 = vmatpush.bf16.msra.mxu2 %v265_v13 }
  0x94   :  { %v123_v4 = vpop.f32.mrf.mxu0 }
  0x95   :  { %v124_v6 = vadd.f32 %v279_v5, %v123_v4 }
  0x97   :  { %v128_v9 = vmax.f32 %v124_v6, 0.0 }
  0x9c   :  { %v125_v7 = vpop.f32.mrf.mxu0 }
  0x9d   :  { %v126_v8 = vadd.f32 %v279_v5, %v125_v7 }
  0x9f   :  { %v129_v10 = vmax.f32 %v126_v8, 0.0 }
  0xa1   :  { %v130_v11 = vpack.c.bf16 %v129_v10, %v128_v9 }
  0xa3   :  { %251 = vmatmul.msk.bf16.vlgmr.msra.gmra.mxu1 %vm151_vm1, %v130_v11 }
 0x120   :  { %v164_v14 = vpop.f32.mrf.mxu1 }
 0x121   :  { %v165_v16 = vadd.f32 %v280_v15, %v164_v14 }
 0x123   :  { %v169_v19 = vmax.f32 %v165_v16, 0.0 }
 0x128   :  { %v166_v17 = vpop.f32.mrf.mxu1 }
 0x129   :  { %v167_v18 = vadd.f32 %v280_v15, %v166_v17 }
 0x12b   :  { %v170_v20 = vmax.f32 %v167_v18, 0.0 }
 0x12d   :  { %v171_v21 = vpack.c.bf16 %v170_v20, %v169_v19 }
 0x12f   :  { %260 = vmatmul.msk.bf16.vlgmr.msra.gmra.mxu2 %vm151_vm1, %v171_v21 }
 0x1b2   :  { %v204_v22 = vpop.f32.mrf.mxu2 }
 0x1b3   :  { %v205_v25 = vadd.f32 %v281_v23, %v204_v22 }
 0x1ba   :  { %v206_v24 = vpop.f32.mrf.mxu2 }
 0x1bb   :  { %v207_v26 = vadd.f32 %v281_v23, %v206_v24 }
 0x1bd   :  { %v270_v27 = vpack.c.bf16 %v207_v26, %v205_v25 }
 0x1bf   :  { %271 = vst [vmem:[#allocation10] sm:$0xff] %v270_v27  }
 0x1c0   :  { %225 = dma.vmem_to_hbm [thread:$0]  %s218_s25, 128, %s220_s28, [#allocation4], %s411_s9, %s411_s9, %s412_s10  }
 0x1c1   :  { %408 = dma.done.wait [#allocation4], 128  }
 0x1c2   :  { %409 = vsyncadd [#allocation4], 4294967168 }
 0x1c3   :  { %230 = vsyncpa [#allocation3], 1 }
 0x1c4   :  { %231 = vsyncpa [#allocation6], 1 }
 0x1c5   :  { %232 = vsyncpa [#allocation9], 1 }
 0x1c6   :  { %233 = vsyncpa [#allocation4], 1 }

</bundles_post_ra>
